<compile_context>
chip_gen: v5e
topology: v5e:2x2
jax: 0.10.0
libtpu: 0.0.40
codegen_flags: <defaults>
</compile_context>

<pallas_src>
import functools

import jax
import jax.numpy as jnp
from jax.experimental import pallas as pl
from jax.experimental.pallas import tpu as pltpu

NEG_SLOPE = 0.01   # nn.LeakyReLU default
BN_EPS = 1e-5      # nn.BatchNorm1d default
LN_EPS = 1e-5      # nn.LayerNorm default


def _round_up(x, m):
    return (x + m - 1) // m * m


def _leaky_relu(x):
    return jnp.where(x > 0, x, NEG_SLOPE * x)


def _layernorm_noaffine(x):
    mu = jnp.mean(x, axis=-1, keepdims=True)
    xc = x - mu
    var = jnp.mean(xc * xc, axis=-1, keepdims=True)
    return xc * jax.lax.rsqrt(var + LN_EPS)


def multimodal_kernel(exp_ref, graph_ref,
                      w1, b1, w2, b2,
                      wx, wg, bias1,
                      wf2, bf2,
                      wfin, bfin,
                      out_ref):
    f32 = jnp.float32
    bf16 = jnp.bfloat16

    # ---- ExperimentConditionModule (eval BN folded into linears, dropout = id) ----
    x = jnp.dot(exp_ref[...], w1[...], preferred_element_type=f32) + b1[...]
    x = _leaky_relu(x)
    x = jnp.dot(x.astype(bf16), w2[...], preferred_element_type=f32) + b2[...]
    x = _leaky_relu(x)

    # ---- attention fusion + (fusion_layer_1 + residual1), fully pre-folded ----
    #   h1_pre = (p0*graph + p1*(x@w3+b3)) @ (wf1+wr1) + (bf1+br1)
    #          =  x @ Wx  +  graph @ Wg  +  bias1
    h = jnp.dot(x.astype(bf16), wx[...], preferred_element_type=f32)
    h = h + jnp.dot(graph_ref[...], wg[...], preferred_element_type=f32)
    h = h + bias1[...]
    h = _layernorm_noaffine(_leaky_relu(h))          # ln1 affine folded into wf2/bf2

    # ---- fusion stage 2 (fusion_layer_2 + residual2 pre-summed) ----
    h2 = jnp.dot(h.astype(bf16), wf2[...], preferred_element_type=f32) + bf2[...]
    h2 = _layernorm_noaffine(_leaky_relu(h2))        # ln2 affine folded into wfin/bfin

    # ---- final layer (lane-padded to 128 outputs; bf16 writeback) ----
    out = jnp.dot(h2.astype(bf16), wfin[...], preferred_element_type=f32) + bfin[...]
    out_ref[...] = out.astype(out_ref.dtype)


@functools.partial(jax.jit, static_argnames=("num_tasks", "batch_tile"))
def multimodal_forward(graph_rep, exp_conditions, params, *, num_tasks,
                       batch_tile=1024):
    f32, bf16 = jnp.float32, jnp.bfloat16
    B, exp_dim = exp_conditions.shape
    emb_dim = graph_rep.shape[1]

    # ------------------ wrapper-side parameter folding (exact, eval mode) ----------
    probs = jax.nn.softmax(params["attn"].reshape(-1).astype(f32))
    p0, p1 = probs[0], probs[1]

    # eval-mode BatchNorm folded into the preceding Linear
    def fold_bn(w, b, g, be, m, v):
        s = g * jax.lax.rsqrt(v + BN_EPS)                    # (1, C)
        return w * s, (b - m) * s + be

    w1, b1 = fold_bn(params["w1"], params["b1"], params["bn1_g"], params["bn1_b"],
                     params["bn1_m"], params["bn1_v"])
    w2, b2 = fold_bn(params["w2"], params["b2"], params["bn2_g"], params["bn2_b"],
                     params["bn2_m"], params["bn2_v"])

    # fusion/residual matmuls take the same input -> pre-sum weights / biases
    wf1s = params["wf1"] + params["wr1"]
    bf1s = params["bf1"] + params["br1"]
    wf2s = params["wf2"] + params["wr2"]
    bf2s = params["bf2"] + params["br2"]

    # attention + w3 + wf1 fused into an MXU-shape-friendly (256, 256) product
    wx = p1 * (params["w3"] @ wf1s)                          # (256, 256)
    wg = p0 * wf1s                                           # (emb_dim, 256)
    bias1 = p1 * (params["b3"] @ wf1s) + bf1s                # (1, 256)

    # LayerNorm affines folded into the following linears
    wf2f = wf2s * params["ln1_g"].reshape(-1, 1)             # (256, 128)
    bf2f = bf2s + params["ln1_b"] @ wf2s                     # (1, 128)
    wfinf = params["wfin"] * params["ln2_g"].reshape(-1, 1)  # (128, num_tasks)
    bfinf = params["bfin"] + params["ln2_b"] @ params["wfin"]

    # lane-dense output: zero-pad the final layer to a multiple of 128 columns
    n_pad = _round_up(max(num_tasks, 1), 128)
    wfin_p = jnp.zeros((128, n_pad), f32).at[:, :num_tasks].set(wfinf)
    bfin_p = jnp.zeros((1, n_pad), f32).at[:, :num_tasks].set(bfinf)

    # bf16 weights for the MXU; biases stay f32 (added to f32 accumulators)
    w1, w2, wx, wg, wf2f, wfin_p = (a.astype(bf16)
                                    for a in (w1, w2, wx, wg, wf2f, wfin_p))

    # bf16 activation streams (exp cast is bit-exact w.r.t. the in-kernel cast)
    exp_conditions = exp_conditions.astype(bf16)
    graph_rep = graph_rep.astype(bf16)

    # ------------------ batch tiling ------------------
    tb = batch_tile
    if B <= tb:
        if B > 16:
            # split small batches over >=2 grid steps so v7x's 2nd TC gets work
            tb = max(16, _round_up(pl.cdiv(B, 2), 16))
        else:
            tb = 16                                  # multiple of 16 (bf16 sublanes)
    b_pad = _round_up(B, tb)
    if b_pad != B:
        exp_conditions = jnp.pad(exp_conditions, ((0, b_pad - B), (0, 0)))
        graph_rep = jnp.pad(graph_rep, ((0, b_pad - B), (0, 0)))
    grid = (b_pad // tb,)

    def batch_spec(c):
        return pl.BlockSpec((tb, c), lambda i: (i, 0))

    def const_spec(a):
        return pl.BlockSpec(a.shape, lambda i: (0, 0))   # weights stay resident

    consts = (w1, b1, w2, b2, wx, wg, bias1, wf2f, bf2f, wfin_p, bfin_p)
    in_specs = ([batch_spec(exp_dim), batch_spec(emb_dim)]
                + [const_spec(a) for a in consts])

    out = pl.pallas_call(
        multimodal_kernel,
        out_shape=jax.ShapeDtypeStruct((b_pad, n_pad), bf16),
        grid=grid,
        in_specs=in_specs,
        out_specs=batch_spec(n_pad),
        compiler_params=pltpu.CompilerParams(
            dimension_semantics=("parallel",)),
    )(exp_conditions, graph_rep, *consts)

    # tiny (B, num_tasks) slice + upcast outside the kernel
    return out[:B, :num_tasks].astype(f32)


# ---------------------------------------------------------------------------
# Pure-JAX f32 reference (mirrors the PyTorch forward, eval mode)
# ---------------------------------------------------------------------------
def _layernorm_affine(x, gamma, beta):
    mu = jnp.mean(x, axis=-1, keepdims=True)
    xc = x - mu
    var = jnp.mean(xc * xc, axis=-1, keepdims=True)
    return xc * jax.lax.rsqrt(var + LN_EPS) * gamma + beta


def multimodal_reference(graph_rep, exp_conditions, params):
    def bn(x, g, b, m, v):
        return (x - m) * jax.lax.rsqrt(v + BN_EPS) * g + b

    x = exp_conditions @ params["w1"] + params["b1"]
    x = _leaky_relu(bn(x, params["bn1_g"], params["bn1_b"],
                       params["bn1_m"], params["bn1_v"]))
    x = x @ params["w2"] + params["b2"]
    x = _leaky_relu(bn(x, params["bn2_g"], params["bn2_b"],
                       params["bn2_m"], params["bn2_v"]))
    exp_rep = x @ params["w3"] + params["b3"]

    probs = jax.nn.softmax(params["attn"].reshape(-1))
    weighted = probs[0] * graph_rep + probs[1] * exp_rep

    h1 = (weighted @ params["wf1"] + params["bf1"]
          + weighted @ params["wr1"] + params["br1"])
    h1 = _layernorm_affine(_leaky_relu(h1), params["ln1_g"], params["ln1_b"])
    h2 = (h1 @ params["wf2"] + params["bf2"]
          + h1 @ params["wr2"] + params["br2"])
    h2 = _layernorm_affine(_leaky_relu(h2), params["ln2_g"], params["ln2_b"])
    return h2 @ params["wfin"] + params["bfin"]


def init_params(key, exp_dim, emb_dim, num_tasks):
    ks = iter(jax.random.split(key, 40))

    def w(shape, scale=0.1):
        return (scale * jax.random.normal(next(ks), shape)).astype(jnp.float32)

    def row(n, scale=0.1):                  # 1-D params stored as (1, n)
        return w((1, n), scale)

    def pos_row(n):                         # strictly-positive running variance
        return (0.5 + jnp.abs(0.5 * jax.random.normal(next(ks), (1, n)))).astype(jnp.float32)

    return dict(
        attn=w((1, 2), 1.0),
        # ExperimentConditionModule
        w1=w((exp_dim, 128)), b1=row(128),
        bn1_g=row(128, 1.0), bn1_b=row(128), bn1_m=row(128), bn1_v=pos_row(128),
        w2=w((128, 256)), b2=row(256),
        bn2_g=row(256, 1.0), bn2_b=row(256), bn2_m=row(256), bn2_v=pos_row(256),
        w3=w((256, emb_dim)), b3=row(emb_dim),
        # Fusion / residual / norms / final
        wf1=w((emb_dim, 256)), bf1=row(256),
        wr1=w((emb_dim, 256)), br1=row(256),
        ln1_g=row(256, 1.0), ln1_b=row(256),
        wf2=w((256, 128)), bf2=row(128),
        wr2=w((256, 128)), br2=row(128),
        ln2_g=row(128, 1.0), ln2_b=row(128),
        wfin=w((128, num_tasks)), bfin=row(num_tasks),
    )


if __name__ == "__main__":
    B, EXP_DIM, EMB_DIM, NUM_TASKS = 8, 16, 32, 4

    key = jax.random.PRNGKey(0)
    k_g, k_e, k_p = jax.random.split(key, 3)
    graph_rep = jax.random.normal(k_g, (B, EMB_DIM), dtype=jnp.float32)
    exp_conditions = jax.random.normal(k_e, (B, EXP_DIM), dtype=jnp.float32)
    params = init_params(k_p, EXP_DIM, EMB_DIM, NUM_TASKS)

    out = multimodal_forward(graph_rep, exp_conditions, params, num_tasks=NUM_TASKS)
    jax.block_until_ready(out)

    assert out.shape == (B, NUM_TASKS)
    assert bool(jnp.all(jnp.isfinite(out)))

    ref = multimodal_reference(graph_rep, exp_conditions, params)
    max_err = float(jnp.max(jnp.abs(out - ref)))
    assert max_err < 0.15, f"max abs err vs f32 reference: {max_err}"

    print("KERNEL_OK")
</pallas_src>

<mosaic_0001>
module attributes {stable_mosaic.version = 11 : i64} {
  func.func @multimodal_kernel(%arg0: i32, %arg1: memref<16x16xbf16, #tpu.memory_space<vmem>>, %arg2: memref<16x32xbf16, #tpu.memory_space<vmem>>, %arg3: memref<16x128xbf16, #tpu.memory_space<vmem>>, %arg4: memref<1x128xf32, #tpu.memory_space<vmem>>, %arg5: memref<128x256xbf16, #tpu.memory_space<vmem>>, %arg6: memref<1x256xf32, #tpu.memory_space<vmem>>, %arg7: memref<256x256xbf16, #tpu.memory_space<vmem>>, %arg8: memref<32x256xbf16, #tpu.memory_space<vmem>>, %arg9: memref<1x256xf32, #tpu.memory_space<vmem>>, %arg10: memref<256x128xbf16, #tpu.memory_space<vmem>>, %arg11: memref<1x128xf32, #tpu.memory_space<vmem>>, %arg12: memref<128x128xbf16, #tpu.memory_space<vmem>>, %arg13: memref<1x128xf32, #tpu.memory_space<vmem>>, %arg14: memref<16x128xbf16, #tpu.memory_space<vmem>>) attributes {dimension_semantics = [#tpu.dimension_semantics<parallel>], iteration_bounds = array<i64: 1>, scalar_prefetch = 0 : i64, scratch_operands = 0 : i64, tpu.core_type = #tpu.core_type<tc>, window_params = [{transform_indices = @transform_0, window_bounds = array<i64: 16, 16>}, {transform_indices = @transform_1, window_bounds = array<i64: 16, 32>}, {pipeline_mode = #tpu.pipeline_mode<synchronous>, transform_indices = @transform_2, window_bounds = array<i64: 16, 128>}, {pipeline_mode = #tpu.pipeline_mode<synchronous>, transform_indices = @transform_3, window_bounds = array<i64: 1, 128>}, {pipeline_mode = #tpu.pipeline_mode<synchronous>, transform_indices = @transform_4, window_bounds = array<i64: 128, 256>}, {pipeline_mode = #tpu.pipeline_mode<synchronous>, transform_indices = @transform_5, window_bounds = array<i64: 1, 256>}, {pipeline_mode = #tpu.pipeline_mode<synchronous>, transform_indices = @transform_6, window_bounds = array<i64: 256, 256>}, {pipeline_mode = #tpu.pipeline_mode<synchronous>, transform_indices = @transform_7, window_bounds = array<i64: 32, 256>}, {pipeline_mode = #tpu.pipeline_mode<synchronous>, transform_indices = @transform_8, window_bounds = array<i64: 1, 256>}, {pipeline_mode = #tpu.pipeline_mode<synchronous>, transform_indices = @transform_9, window_bounds = array<i64: 256, 128>}, {pipeline_mode = #tpu.pipeline_mode<synchronous>, transform_indices = @transform_10, window_bounds = array<i64: 1, 128>}, {pipeline_mode = #tpu.pipeline_mode<synchronous>, transform_indices = @transform_11, window_bounds = array<i64: 128, 128>}, {pipeline_mode = #tpu.pipeline_mode<synchronous>, transform_indices = @transform_12, window_bounds = array<i64: 1, 128>}, {transform_indices = @transform_13, window_bounds = array<i64: 16, 128>}]} {
    %c0 = arith.constant 0 : index
    %c0_0 = arith.constant 0 : index
    %0 = vector.load %arg1[%c0, %c0_0] : memref<16x16xbf16, #tpu.memory_space<vmem>>, vector<16x16xbf16>
    %c0_1 = arith.constant 0 : index
    %c0_2 = arith.constant 0 : index
    %1 = vector.load %arg3[%c0_1, %c0_2] : memref<16x128xbf16, #tpu.memory_space<vmem>>, vector<16x128xbf16>
    %cst = arith.constant dense<0.000000e+00> : vector<16x128xf32>
    %2 = tpu.matmul %0, %1, %cst {dimension_numbers = #tpu.dot_dimension_numbers<[1], [0], [0], [1], [0, 0, 1, 1], [], []>} : vector<16x16xbf16>, vector<16x128xbf16>, vector<16x128xf32> -> vector<16x128xf32>
    %c0_3 = arith.constant 0 : index
    %c0_4 = arith.constant 0 : index
    %3 = vector.load %arg4[%c0_3, %c0_4] : memref<1x128xf32, #tpu.memory_space<vmem>>, vector<1x128xf32>
    %4 = vector.broadcast %3 : vector<1x128xf32> to vector<16x128xf32>
    %5 = arith.addf %2, %4 : vector<16x128xf32>
    %cst_5 = arith.constant 0.000000e+00 : f32
    %6 = vector.broadcast %cst_5 : f32 to vector<16x128xf32>
    %7 = arith.cmpf ogt, %5, %6 : vector<16x128xf32>
    %cst_6 = arith.constant 0.00999999977 : f32
    %8 = vector.broadcast %cst_6 : f32 to vector<16x128xf32>
    %9 = arith.mulf %8, %5 : vector<16x128xf32>
    %10 = arith.select %7, %5, %9 : vector<16x128xi1>, vector<16x128xf32>
    %11 = arith.truncf %10 : vector<16x128xf32> to vector<16x128xbf16>
    %c0_7 = arith.constant 0 : index
    %c0_8 = arith.constant 0 : index
    %12 = vector.load %arg5[%c0_7, %c0_8] : memref<128x256xbf16, #tpu.memory_space<vmem>>, vector<128x256xbf16>
    %cst_9 = arith.constant dense<0.000000e+00> : vector<16x256xf32>
    %13 = tpu.matmul %11, %12, %cst_9 {dimension_numbers = #tpu.dot_dimension_numbers<[1], [0], [0], [1], [0, 0, 1, 1], [], []>} : vector<16x128xbf16>, vector<128x256xbf16>, vector<16x256xf32> -> vector<16x256xf32>
    %c0_10 = arith.constant 0 : index
    %c0_11 = arith.constant 0 : index
    %14 = vector.load %arg6[%c0_10, %c0_11] : memref<1x256xf32, #tpu.memory_space<vmem>>, vector<1x256xf32>
    %15 = vector.broadcast %14 : vector<1x256xf32> to vector<16x256xf32>
    %16 = arith.addf %13, %15 : vector<16x256xf32>
    %cst_12 = arith.constant 0.000000e+00 : f32
    %17 = vector.broadcast %cst_12 : f32 to vector<16x256xf32>
    %18 = arith.cmpf ogt, %16, %17 : vector<16x256xf32>
    %cst_13 = arith.constant 0.00999999977 : f32
    %19 = vector.broadcast %cst_13 : f32 to vector<16x256xf32>
    %20 = arith.mulf %19, %16 : vector<16x256xf32>
    %21 = arith.select %18, %16, %20 : vector<16x256xi1>, vector<16x256xf32>
    %22 = arith.truncf %21 : vector<16x256xf32> to vector<16x256xbf16>
    %c0_14 = arith.constant 0 : index
    %c0_15 = arith.constant 0 : index
    %23 = vector.load %arg7[%c0_14, %c0_15] : memref<256x256xbf16, #tpu.memory_space<vmem>>, vector<256x256xbf16>
    %cst_16 = arith.constant dense<0.000000e+00> : vector<16x256xf32>
    %24 = tpu.matmul %22, %23, %cst_16 {dimension_numbers = #tpu.dot_dimension_numbers<[1], [0], [0], [1], [0, 0, 1, 1], [], []>} : vector<16x256xbf16>, vector<256x256xbf16>, vector<16x256xf32> -> vector<16x256xf32>
    %c0_17 = arith.constant 0 : index
    %c0_18 = arith.constant 0 : index
    %25 = vector.load %arg2[%c0_17, %c0_18] : memref<16x32xbf16, #tpu.memory_space<vmem>>, vector<16x32xbf16>
    %c0_19 = arith.constant 0 : index
    %c0_20 = arith.constant 0 : index
    %26 = vector.load %arg8[%c0_19, %c0_20] : memref<32x256xbf16, #tpu.memory_space<vmem>>, vector<32x256xbf16>
    %cst_21 = arith.constant dense<0.000000e+00> : vector<16x256xf32>
    %27 = tpu.matmul %25, %26, %cst_21 {dimension_numbers = #tpu.dot_dimension_numbers<[1], [0], [0], [1], [0, 0, 1, 1], [], []>} : vector<16x32xbf16>, vector<32x256xbf16>, vector<16x256xf32> -> vector<16x256xf32>
    %28 = arith.addf %24, %27 : vector<16x256xf32>
    %c0_22 = arith.constant 0 : index
    %c0_23 = arith.constant 0 : index
    %29 = vector.load %arg9[%c0_22, %c0_23] : memref<1x256xf32, #tpu.memory_space<vmem>>, vector<1x256xf32>
    %30 = vector.broadcast %29 : vector<1x256xf32> to vector<16x256xf32>
    %31 = arith.addf %28, %30 : vector<16x256xf32>
    %cst_24 = arith.constant 0.000000e+00 : f32
    %32 = vector.broadcast %cst_24 : f32 to vector<16x256xf32>
    %33 = arith.cmpf ogt, %31, %32 : vector<16x256xf32>
    %cst_25 = arith.constant 0.00999999977 : f32
    %34 = vector.broadcast %cst_25 : f32 to vector<16x256xf32>
    %35 = arith.mulf %34, %31 : vector<16x256xf32>
    %36 = arith.select %33, %31, %35 : vector<16x256xi1>, vector<16x256xf32>
    %cst_26 = arith.constant dense<0.000000e+00> : vector<16xf32>
    %37 = vector.multi_reduction <add>, %36, %cst_26 [1] : vector<16x256xf32> to vector<16xf32>
    %38 = vector.shape_cast %37 : vector<16xf32> to vector<16x1xf32>
    %cst_27 = arith.constant 2.560000e+02 : f32
    %39 = vector.broadcast %cst_27 : f32 to vector<16x1xf32>
    %40 = arith.divf %38, %39 : vector<16x1xf32>
    %41 = vector.broadcast %40 : vector<16x1xf32> to vector<16x256xf32>
    %42 = arith.subf %36, %41 : vector<16x256xf32>
    %43 = arith.mulf %42, %42 : vector<16x256xf32>
    %cst_28 = arith.constant dense<0.000000e+00> : vector<16xf32>
    %44 = vector.multi_reduction <add>, %43, %cst_28 [1] : vector<16x256xf32> to vector<16xf32>
    %45 = vector.shape_cast %44 : vector<16xf32> to vector<16x1xf32>
    %cst_29 = arith.constant 2.560000e+02 : f32
    %46 = vector.broadcast %cst_29 : f32 to vector<16x1xf32>
    %47 = arith.divf %45, %46 : vector<16x1xf32>
    %cst_30 = arith.constant 9.99999974E-6 : f32
    %48 = vector.broadcast %cst_30 : f32 to vector<16x1xf32>
    %49 = arith.addf %47, %48 : vector<16x1xf32>
    %50 = math.rsqrt %49 : vector<16x1xf32>
    %51 = vector.broadcast %50 : vector<16x1xf32> to vector<16x256xf32>
    %52 = arith.mulf %42, %51 : vector<16x256xf32>
    %53 = arith.truncf %52 : vector<16x256xf32> to vector<16x256xbf16>
    %c0_31 = arith.constant 0 : index
    %c0_32 = arith.constant 0 : index
    %54 = vector.load %arg10[%c0_31, %c0_32] : memref<256x128xbf16, #tpu.memory_space<vmem>>, vector<256x128xbf16>
    %cst_33 = arith.constant dense<0.000000e+00> : vector<16x128xf32>
    %55 = tpu.matmul %53, %54, %cst_33 {dimension_numbers = #tpu.dot_dimension_numbers<[1], [0], [0], [1], [0, 0, 1, 1], [], []>} : vector<16x256xbf16>, vector<256x128xbf16>, vector<16x128xf32> -> vector<16x128xf32>
    %c0_34 = arith.constant 0 : index
    %c0_35 = arith.constant 0 : index
    %56 = vector.load %arg11[%c0_34, %c0_35] : memref<1x128xf32, #tpu.memory_space<vmem>>, vector<1x128xf32>
    %57 = vector.broadcast %56 : vector<1x128xf32> to vector<16x128xf32>
    %58 = arith.addf %55, %57 : vector<16x128xf32>
    %cst_36 = arith.constant 0.000000e+00 : f32
    %59 = vector.broadcast %cst_36 : f32 to vector<16x128xf32>
    %60 = arith.cmpf ogt, %58, %59 : vector<16x128xf32>
    %cst_37 = arith.constant 0.00999999977 : f32
    %61 = vector.broadcast %cst_37 : f32 to vector<16x128xf32>
    %62 = arith.mulf %61, %58 : vector<16x128xf32>
    %63 = arith.select %60, %58, %62 : vector<16x128xi1>, vector<16x128xf32>
    %cst_38 = arith.constant dense<0.000000e+00> : vector<16xf32>
    %64 = vector.multi_reduction <add>, %63, %cst_38 [1] : vector<16x128xf32> to vector<16xf32>
    %65 = vector.shape_cast %64 : vector<16xf32> to vector<16x1xf32>
    %cst_39 = arith.constant 1.280000e+02 : f32
    %66 = vector.broadcast %cst_39 : f32 to vector<16x1xf32>
    %67 = arith.divf %65, %66 : vector<16x1xf32>
    %68 = vector.broadcast %67 : vector<16x1xf32> to vector<16x128xf32>
    %69 = arith.subf %63, %68 : vector<16x128xf32>
    %70 = arith.mulf %69, %69 : vector<16x128xf32>
    %cst_40 = arith.constant dense<0.000000e+00> : vector<16xf32>
    %71 = vector.multi_reduction <add>, %70, %cst_40 [1] : vector<16x128xf32> to vector<16xf32>
    %72 = vector.shape_cast %71 : vector<16xf32> to vector<16x1xf32>
    %cst_41 = arith.constant 1.280000e+02 : f32
    %73 = vector.broadcast %cst_41 : f32 to vector<16x1xf32>
    %74 = arith.divf %72, %73 : vector<16x1xf32>
    %cst_42 = arith.constant 9.99999974E-6 : f32
    %75 = vector.broadcast %cst_42 : f32 to vector<16x1xf32>
    %76 = arith.addf %74, %75 : vector<16x1xf32>
    %77 = math.rsqrt %76 : vector<16x1xf32>
    %78 = vector.broadcast %77 : vector<16x1xf32> to vector<16x128xf32>
    %79 = arith.mulf %69, %78 : vector<16x128xf32>
    %80 = arith.truncf %79 : vector<16x128xf32> to vector<16x128xbf16>
    %c0_43 = arith.constant 0 : index
    %c0_44 = arith.constant 0 : index
    %81 = vector.load %arg12[%c0_43, %c0_44] : memref<128x128xbf16, #tpu.memory_space<vmem>>, vector<128x128xbf16>
    %cst_45 = arith.constant dense<0.000000e+00> : vector<16x128xf32>
    %82 = tpu.matmul %80, %81, %cst_45 {dimension_numbers = #tpu.dot_dimension_numbers<[1], [0], [0], [1], [0, 0, 1, 1], [], []>} : vector<16x128xbf16>, vector<128x128xbf16>, vector<16x128xf32> -> vector<16x128xf32>
    %c0_46 = arith.constant 0 : index
    %c0_47 = arith.constant 0 : index
    %83 = vector.load %arg13[%c0_46, %c0_47] : memref<1x128xf32, #tpu.memory_space<vmem>>, vector<1x128xf32>
    %84 = vector.broadcast %83 : vector<1x128xf32> to vector<16x128xf32>
    %85 = arith.addf %82, %84 : vector<16x128xf32>
    %86 = arith.truncf %85 : vector<16x128xf32> to vector<16x128xbf16>
    %c0_48 = arith.constant 0 : index
    %c0_49 = arith.constant 0 : index
    %87 = vector.load %arg14[%c0_48, %c0_49] : memref<16x128xbf16, #tpu.memory_space<vmem>>, vector<16x128xbf16>
    tpu.vector_store %arg14[%c0_48, %c0_49], %86 {strides = array<i32>} : memref<16x128xbf16, #tpu.memory_space<vmem>>, vector<16x128xbf16>,
    return
  }
  func.func @transform_0(%arg0: i32) -> (i32, i32) {
    %c0_i32 = arith.constant 0 : i32
    %c0_i32_0 = arith.constant 0 : i32
    return %arg0, %c0_i32 : i32, i32
  }
  func.func @transform_1(%arg0: i32) -> (i32, i32) {
    %c0_i32 = arith.constant 0 : i32
    %c0_i32_0 = arith.constant 0 : i32
    return %arg0, %c0_i32 : i32, i32
  }
  func.func @transform_2(%arg0: i32) -> (i32, i32) {
    %c0_i32 = arith.constant 0 : i32
    %c0_i32_0 = arith.constant 0 : i32
    %c0_i32_1 = arith.constant 0 : i32
    return %c0_i32, %c0_i32_0 : i32, i32
  }
  func.func @transform_3(%arg0: i32) -> (i32, i32) {
    %c0_i32 = arith.constant 0 : i32
    %c0_i32_0 = arith.constant 0 : i32
    %c0_i32_1 = arith.constant 0 : i32
    return %c0_i32, %c0_i32_0 : i32, i32
  }
  func.func @transform_4(%arg0: i32) -> (i32, i32) {
    %c0_i32 = arith.constant 0 : i32
    %c0_i32_0 = arith.constant 0 : i32
    %c0_i32_1 = arith.constant 0 : i32
    return %c0_i32, %c0_i32_0 : i32, i32
  }
  func.func @transform_5(%arg0: i32) -> (i32, i32) {
    %c0_i32 = arith.constant 0 : i32
    %c0_i32_0 = arith.constant 0 : i32
    %c0_i32_1 = arith.constant 0 : i32
    return %c0_i32, %c0_i32_0 : i32, i32
  }
  func.func @transform_6(%arg0: i32) -> (i32, i32) {
    %c0_i32 = arith.constant 0 : i32
    %c0_i32_0 = arith.constant 0 : i32
    %c0_i32_1 = arith.constant 0 : i32
    return %c0_i32, %c0_i32_0 : i32, i32
  }
  func.func @transform_7(%arg0: i32) -> (i32, i32) {
    %c0_i32 = arith.constant 0 : i32
    %c0_i32_0 = arith.constant 0 : i32
    %c0_i32_1 = arith.constant 0 : i32
    return %c0_i32, %c0_i32_0 : i32, i32
  }
  func.func @transform_8(%arg0: i32) -> (i32, i32) {
    %c0_i32 = arith.constant 0 : i32
    %c0_i32_0 = arith.constant 0 : i32
    %c0_i32_1 = arith.constant 0 : i32
    return %c0_i32, %c0_i32_0 : i32, i32
  }
  func.func @transform_9(%arg0: i32) -> (i32, i32) {
    %c0_i32 = arith.constant 0 : i32
    %c0_i32_0 = arith.constant 0 : i32
    %c0_i32_1 = arith.constant 0 : i32
    return %c0_i32, %c0_i32_0 : i32, i32
  }
  func.func @transform_10(%arg0: i32) -> (i32, i32) {
    %c0_i32 = arith.constant 0 : i32
    %c0_i32_0 = arith.constant 0 : i32
    %c0_i32_1 = arith.constant 0 : i32
    return %c0_i32, %c0_i32_0 : i32, i32
  }
  func.func @transform_11(%arg0: i32) -> (i32, i32) {
    %c0_i32 = arith.constant 0 : i32
    %c0_i32_0 = arith.constant 0 : i32
    %c0_i32_1 = arith.constant 0 : i32
    return %c0_i32, %c0_i32_0 : i32, i32
  }
  func.func @transform_12(%arg0: i32) -> (i32, i32) {
    %c0_i32 = arith.constant 0 : i32
    %c0_i32_0 = arith.constant 0 : i32
    %c0_i32_1 = arith.constant 0 : i32
    return %c0_i32, %c0_i32_0 : i32, i32
  }
  func.func @transform_13(%arg0: i32) -> (i32, i32) {
    %c0_i32 = arith.constant 0 : i32
    %c0_i32_0 = arith.constant 0 : i32
    return %arg0, %c0_i32 : i32, i32
  }
}

</mosaic_0001>

<bundles_post_ra>
// kernel: multimodal_forward.1
= control target key start
LH: loop header
LB: loop body
LE: loop exit
PB: predicated region body
PF: predicated region fallthrough
CT: control target
= control target key end

     0   :  { %vm64_vm0 = vcmask 130048   ;;  %vm296_vm1 = vcmask 261120   ;;  %s1855_s2 = inlined_call_operand.vmem [shape: bf16[16,128], index: 2, kind: input, shape index: {}]   ;;  %s1856_s0 = inlined_call_operand.vmem [shape: bf16[16,16], index: 0, kind: input, shape index: {}]   ;;  %s1857_s4 = inlined_call_operand.vmem [shape: bf16[128,256], index: 4, kind: input, shape index: {}]   ;;  %s1858_s3 = inlined_call_operand.vmem [shape: f32[1,128], index: 3, kind: input, shape index: {}]   ;;  %s1859_s7 = inlined_call_operand.vmem [shape: bf16[32,256], index: 7, kind: input, shape index: {}]   ;;  %s1860_s6 = inlined_call_operand.vmem [shape: bf16[256,256], index: 6, kind: input, shape index: {}]   ;;  %s1861_s1 = inlined_call_operand.vmem [shape: bf16[16,32], index: 1, kind: input, shape index: {}]   ;;  %s1862_s5 = inlined_call_operand.vmem [shape: f32[1,256], index: 5, kind: input, shape index: {}]   ;;  %s1863_s8 = inlined_call_operand.vmem [shape: f32[1,256], index: 8, kind: input, shape index: {}]   ;;  %s1864_s9 = inlined_call_operand.vmem [shape: bf16[256,128], index: 9, kind: input, shape index: {}]   ;;  %s1865_s10 = inlined_call_operand.vmem [shape: f32[1,128], index: 10, kind: input, shape index: {}]   ;;  %s1866_s12 = inlined_call_operand.vmem [shape: f32[1,128], index: 12, kind: input, shape index: {}]   ;;  %s1867_s11 = inlined_call_operand.vmem [shape: bf16[128,128], index: 11, kind: input, shape index: {}]   ;;  %s1868_s13 = inlined_call_operand.vmem [shape: bf16[16,128], index: 13, kind: output, shape index: {}]  }
   0x1   :  { %v1249_v0 = vld [vmem:[%s1855_s2] sm:$0xff]  ;;  %v996_v2 = vld [vmem:[%s1857_s4 + $0x70] sm:$0xf]  ;;  %v1265_v3 = vld [vmem:[%s1857_s4 + $0x74] sm:$0xf0] }
   0x2   :  { %v1248_v1 = vld [vmem:[%s1856_s0] sm:$0xff]  ;;  %v1264_v4 = vld [vmem:[%s1857_s4 + $0x74] sm:$0xf]  ;;  %v998_v5 = vld [vmem:[%s1857_s4 + $0x78] sm:$0xf0]  ;;  %75 = vmatpush.bf16.msra.mxu0 %v1249_v0  ;;  %v997_v6 = vor.u32 %v1265_v3, %v996_v2 }
   0x3   :  { %v1001_v7 = vor.u32 %v1264_v4, %v998_v5  ;;  %v988_v8 = vld [vmem:[%s1857_s4 + $0x60] sm:$0xf]  ;;  %v1263_v9 = vld [vmem:[%s1857_s4 + $0x64] sm:$0xf0]  ;;  %v1262_v10 = vld [vmem:[%s1857_s4 + $0x64] sm:$0xf] }
   0x4   :  { %v990_v11 = vld [vmem:[%s1857_s4 + $0x68] sm:$0xf0]  ;;  %191 = vmatpush.bf16.msra.mxu1 %v997_v6  ;;  %v989_v12 = vor.u32 %v1263_v9, %v988_v8  ;;  %v980_v14 = vld [vmem:[%s1857_s4 + $0x50] sm:$0xf]  ;;  %v1261_v15 = vld [vmem:[%s1857_s4 + $0x54] sm:$0xf0] }
   0x5   :  { %205 = vmatpush.bf16.msra.mxu2 %v1001_v7  ;;  %v993_v13 = vor.u32 %v1262_v10, %v990_v11  ;;  %937 = vmatmul.msk.bf16.vlgmr.msra.gmra.mxu0 %vm64_vm0, %v1248_v1  ;;  %v1260_v16 = vld [vmem:[%s1857_s4 + $0x54] sm:$0xf]  ;;  %v982_v17 = vld [vmem:[%s1857_s4 + $0x58] sm:$0xf0]  ;;  %v981_v18 = vor.u32 %v1261_v15, %v980_v14  ;;  %v972_v20 = vld [vmem:[%s1857_s4 + $0x40] sm:$0xf] }
   0x6   :  { %v985_v19 = vor.u32 %v1260_v16, %v982_v17  ;;  %v1259_v21 = vld [vmem:[%s1857_s4 + $0x44] sm:$0xf0]  ;;  %v1258_v22 = vld [vmem:[%s1857_s4 + $0x44] sm:$0xf]  ;;  %v974_v23 = vld [vmem:[%s1857_s4 + $0x48] sm:$0xf0] }
   0x7   :  { %v973_v24 = vor.u32 %v1259_v21, %v972_v20  ;;  %v977_v25 = vor.u32 %v1258_v22, %v974_v23  ;;  %v964_v26 = vld [vmem:[%s1857_s4 + $0x30] sm:$0xf]  ;;  %v1257_v27 = vld [vmem:[%s1857_s4 + $0x34] sm:$0xf0]  ;;  %v1256_v28 = vld [vmem:[%s1857_s4 + $0x34] sm:$0xf] }
   0x8   :  { %192 = vmatpush.bf16.msra.mxu1 %v989_v12  ;;  %v965_v29 = vor.u32 %v1257_v27, %v964_v26  ;;  %v966_v30 = vld [vmem:[%s1857_s4 + $0x38] sm:$0xf0]  ;;  %v956_v32 = vld [vmem:[%s1857_s4 + $0x20] sm:$0xf]  ;;  %v1255_v33 = vld [vmem:[%s1857_s4 + $0x24] sm:$0xf0] }
   0x9   :  { %206 = vmatpush.bf16.msra.mxu2 %v993_v13  ;;  %v969_v31 = vor.u32 %v1256_v28, %v966_v30  ;;  %v1254_v34 = vld [vmem:[%s1857_s4 + $0x24] sm:$0xf]  ;;  %v957_v35 = vor.u32 %v1255_v33, %v956_v32  ;;  %v958_v36 = vld [vmem:[%s1857_s4 + $0x28] sm:$0xf0]  ;;  %v948_v38 = vld [vmem:[%s1857_s4 + $0x10] sm:$0xf] }
   0xa   :  { %v961_v37 = vor.u32 %v1254_v34, %v958_v36  ;;  %v1253_v39 = vld [vmem:[%s1857_s4 + $0x14] sm:$0xf0]  ;;  %v1252_v40 = vld [vmem:[%s1857_s4 + $0x14] sm:$0xf]  ;;  %v950_v42 = vld [vmem:[%s1857_s4 + $0x18] sm:$0xf0] }
   0xb   :  { %v949_v41 = vor.u32 %v1253_v39, %v948_v38  ;;  %v953_v43 = vor.u32 %v1252_v40, %v950_v42  ;;  %v940_v44 = vld [vmem:[%s1857_s4] sm:$0xf]  ;;  %v1251_v45 = vld [vmem:[%s1857_s4 + $0x4] sm:$0xf0]  ;;  %v1250_v46 = vld [vmem:[%s1857_s4 + $0x4] sm:$0xf] }
   0xc   :  { %193 = vmatpush.bf16.msra.mxu1 %v981_v18  ;;  %v941_v47 = vor.u32 %v1251_v45, %v940_v44  ;;  %v942_v48 = vld [vmem:[%s1857_s4 + $0x8] sm:$0xf0]  ;;  %v1016_v50 = vld [vmem:[%s1859_s7 + $0x10] sm:$0xf]  ;;  %v1302_v51 = vld [vmem:[%s1859_s7 + $0x14] sm:$0xf0] }
   0xd   :  { %207 = vmatpush.bf16.msra.mxu2 %v985_v19  ;;  %v945_v49 = vor.u32 %v1250_v46, %v942_v48  ;;  %v1008_v52 = vld [vmem:[%s1859_s7] sm:$0xf]  ;;  %v1017_v53 = vor.u32 %v1302_v51, %v1016_v50  ;;  %v1300_v54 = vld [vmem:[%s1859_s7 + $0x4] sm:$0xf0]  ;;  %v1082_v55 = vld [vmem:[%s1860_s6 + $0x70] sm:$0xf] }
   0xe   :  { %v1281_v56 = vld [vmem:[%s1860_s6 + $0x74] sm:$0xf0]  ;;  %v1280_v57 = vld [vmem:[%s1860_s6 + $0x74] sm:$0xf]  ;;  %v1084_v58 = vld [vmem:[%s1860_s6 + $0x78] sm:$0xf0]  ;;  %v1009_v60 = vor.u32 %v1300_v54, %v1008_v52 }
   0xf   :  { %v1301_v59 = vld [vmem:[%s1859_s7 + $0x14] sm:$0xf]  ;;  %306 = vmatpush.bf16.msra.mxu3 %v1017_v53  ;;  %v1087_v61 = vor.u32 %v1280_v57, %v1084_v58  ;;  %v1018_v62 = vld [vmem:[%s1859_s7 + $0x18] sm:$0xf0]  ;;  %v1074_v63 = vld [vmem:[%s1860_s6 + $0x60] sm:$0xf]  ;;  %v1083_v1 = vor.u32 %v1281_v56, %v1082_v55 }
  0x10   :  { %194 = vmatpush.bf16.msra.mxu1 %v973_v24  ;;  %v1279_v0 = vld [vmem:[%s1860_s6 + $0x64] sm:$0xf0]  ;;  %v1021_v2 = vor.u32 %v1301_v59, %v1018_v62  ;;  %v1278_v3 = vld [vmem:[%s1860_s6 + $0x64] sm:$0xf]  ;;  %v1076_v4 = vld [vmem:[%s1860_s6 + $0x68] sm:$0xf0] }
  0x11   :  { %208 = vmatpush.bf16.msra.mxu2 %v977_v25  ;;  %v1299_v5 = vld [vmem:[%s1859_s7 + $0x4] sm:$0xf]  ;;  %v1079_v6 = vor.u32 %v1278_v3, %v1076_v4  ;;  %v1010_v7 = vld [vmem:[%s1859_s7 + $0x8] sm:$0xf0]  ;;  %v1146_v8 = vld [vmem:[%s1860_s6 + $0xf0] sm:$0xf]  ;;  %v1075_v18 = vor.u32 %v1279_v0, %v1074_v63 }
  0x12   :  { %v1297_v9 = vld [vmem:[%s1860_s6 + $0xf4] sm:$0xf0]  ;;  %320 = vmatpush.bf16.msrb.mxu0 %v1021_v2  ;;  %v1013_v10 = vor.u32 %v1299_v5, %v1010_v7  ;;  %v1296_v11 = vld [vmem:[%s1860_s6 + $0xf4] sm:$0xf]  ;;  %v1148_v12 = vld [vmem:[%s1860_s6 + $0xf8] sm:$0xf0] }
  0x13   :  { %307 = vmatpush.bf16.msra.mxu3 %v1009_v60  ;;  %v1147_v13 = vor.u32 %v1297_v9, %v1146_v8  ;;  %v1151_v14 = vor.u32 %v1296_v11, %v1148_v12  ;;  %v1066_v15 = vld [vmem:[%s1860_s6 + $0x50] sm:$0xf]  ;;  %v1276_v16 = vld [vmem:[%s1860_s6 + $0x54] sm:$0xf]  ;;  %v1068_v17 = vld [vmem:[%s1860_s6 + $0x58] sm:$0xf0] }
  0x14   :  { %195 = vmatpush.bf16.msra.mxu1 %v965_v29  ;;  %v1138_v19 = vld [vmem:[%s1860_s6 + $0xe0] sm:$0xf]  ;;  %v1295_v20 = vld [vmem:[%s1860_s6 + $0xe4] sm:$0xf0]  ;;  %v1294_v21 = vld [vmem:[%s1860_s6 + $0xe4] sm:$0xf]  ;;  %v1071_v23 = vor.u32 %v1276_v16, %v1068_v17 }
  0x15   :  { %209 = vmatpush.bf16.msra.mxu2 %v969_v31  ;;  %v1277_v22 = vld [vmem:[%s1860_s6 + $0x54] sm:$0xf0]  ;;  %v1140_v24 = vld [vmem:[%s1860_s6 + $0xe8] sm:$0xf0]  ;;  %v1298_v25 = vld [vmem:[%s1861_s1] sm:$0xff]  ;;  %v1139_v29 = vor.u32 %v1295_v20, %v1138_v19 }
  0x16   :  { %321 = vmatpush.bf16.msrb.mxu0 %v1013_v10  ;;  %v1143_v26 = vor.u32 %v1294_v21, %v1140_v24  ;;  %v1274_v27 = vld [vmem:[%s1860_s6 + $0x44] sm:$0xf]  ;;  %v1060_v28 = vld [vmem:[%s1860_s6 + $0x48] sm:$0xf0]  ;;  %1022 = vmatmul.msk.bf16.vlgmr.msra.gmra.mxu3 %vm296_vm1, %v1298_v25  ;;  %v1292_v30 = vld [vmem:[%s1860_s6 + $0xd4] sm:$0xf]  ;;  %v1067_v31 = vor.u32 %v1277_v22, %v1066_v15 }
  0x17   :  { %488 = vmatpush.bf16.msrb.mxu3 %v1083_v1  ;;  %v1130_v32 = vld [vmem:[%s1860_s6 + $0xd0] sm:$0xf]  ;;  %v1293_v33 = vld [vmem:[%s1860_s6 + $0xd4] sm:$0xf0]  ;;  %v1132_v34 = vld [vmem:[%s1860_s6 + $0xd8] sm:$0xf0] }
  0x18   :  { %196 = vmatpush.bf16.msra.mxu1 %v957_v35  ;;  %v1058_v35 = vld [vmem:[%s1860_s6 + $0x40] sm:$0xf]  ;;  %v1275_v36 = vld [vmem:[%s1860_s6 + $0x44] sm:$0xf0]  ;;  %v1135_v38 = vor.u32 %v1292_v30, %v1132_v34  ;;  %v1131_v39 = vor.u32 %v1293_v33, %v1130_v32  ;;  %v1050_v51 = vld [vmem:[%s1860_s6 + $0x30] sm:$0xf] }
  0x19   :  { %210 = vmatpush.bf16.msra.mxu2 %v961_v37  ;;  %v1063_v37 = vor.u32 %v1274_v27, %v1060_v28  ;;  %1023 = vmatmul.msk.bf16.vlgmr.msrb.gmra.mxu0 %vm296_vm1, %v1298_v25  ;;  %v1334_v42 = vld [vmem:[%s1858_s3] ss:$0 sm:$0xff]  ;;  %v1273_v52 = vld [vmem:[%s1860_s6 + $0x34] sm:$0xf0]  ;;  %v1272_v53 = vld [vmem:[%s1860_s6 + $0x34] sm:$0xf] }
  0x1a   :  { %502 = vmatpush.bf16.msra.mxu0 %v1147_v13  ;;  %v1051_v54 = vor.u32 %v1273_v52, %v1050_v51  ;;  %v1052_v55 = vld [vmem:[%s1860_s6 + $0x38] sm:$0xf0]  ;;  %v1122_v57 = vld [vmem:[%s1860_s6 + $0xc0] sm:$0xf]  ;;  %v1291_v58 = vld [vmem:[%s1860_s6 + $0xc4] sm:$0xf0] }
  0x1b   :  { %489 = vmatpush.bf16.msrb.mxu3 %v1075_v18  ;;  %v1055_v56 = vor.u32 %v1272_v53, %v1052_v55  ;;  %v1290_v59 = vld [vmem:[%s1860_s6 + $0xc4] sm:$0xf]  ;;  %v1123_v60 = vor.u32 %v1291_v58, %v1122_v57  ;;  %v1042_v63 = vld [vmem:[%s1860_s6 + $0x20] sm:$0xf]  ;;  %v1271_v0 = vld [vmem:[%s1860_s6 + $0x24] sm:$0xf0] }
  0x1c   :  { %197 = vmatpush.bf16.msra.mxu1 %v949_v41  ;;  %v1059_v41 = vor.u32 %v1275_v36, %v1058_v35  ;;  %v1270_v1 = vld [vmem:[%s1860_s6 + $0x24] sm:$0xf]  ;;  %v1043_v2 = vor.u32 %v1271_v0, %v1042_v63  ;;  %v1044_v3 = vld [vmem:[%s1860_s6 + $0x28] sm:$0xf0]  ;;  %v1114_v5 = vld [vmem:[%s1860_s6 + $0xb0] sm:$0xf] }
  0x1d   :  { %211 = vmatpush.bf16.msra.mxu2 %v953_v43  ;;  %v1047_v4 = vor.u32 %v1270_v1, %v1044_v3  ;;  %v1288_v7 = vld [vmem:[%s1860_s6 + $0xb4] sm:$0xf]  ;;  %v1116_v9 = vld [vmem:[%s1860_s6 + $0xb8] sm:$0xf0]  ;;  %v1034_v11 = vld [vmem:[%s1860_s6 + $0x10] sm:$0xf] }
  0x1e   :  { %503 = vmatpush.bf16.msra.mxu0 %v1139_v29  ;;  %v1119_v10 = vor.u32 %v1288_v7, %v1116_v9  ;;  %v1269_v12 = vld [vmem:[%s1860_s6 + $0x14] sm:$0xf0]  ;;  %v1268_v13 = vld [vmem:[%s1860_s6 + $0x14] sm:$0xf]  ;;  %v1036_v15 = vld [vmem:[%s1860_s6 + $0x18] sm:$0xf0] }
  0x1f   :  { %490 = vmatpush.bf16.msrb.mxu3 %v1067_v31  ;;  %v1039_v16 = vor.u32 %v1268_v13, %v1036_v15  ;;  %v1106_v17 = vld [vmem:[%s1860_s6 + $0xa0] sm:$0xf]  ;;  %v1287_v18 = vld [vmem:[%s1860_s6 + $0xa4] sm:$0xf0]  ;;  %v1286_v19 = vld [vmem:[%s1860_s6 + $0xa4] sm:$0xf] }
  0x20   :  { %198 = vmatpush.bf16.msra.mxu1 %v941_v47  ;;  %v1107_v20 = vor.u32 %v1287_v18, %v1106_v17  ;;  %v1108_v21 = vld [vmem:[%s1860_s6 + $0xa8] sm:$0xf0]  ;;  %v1267_v24 = vld [vmem:[%s1860_s6 + $0x4] sm:$0xf0]  ;;  %v1266_v25 = vld [vmem:[%s1860_s6 + $0x4] sm:$0xf] }
  0x21   :  { %212 = vmatpush.bf16.msra.mxu2 %v945_v49  ;;  %v1111_v22 = vor.u32 %v1286_v19, %v1108_v21  ;;  %v1028_v27 = vld [vmem:[%s1860_s6 + $0x8] sm:$0xf0]  ;;  %v1098_v29 = vld [vmem:[%s1860_s6 + $0x90] sm:$0xf]  ;;  %v1285_v30 = vld [vmem:[%s1860_s6 + $0x94] sm:$0xf0] }
  0x22   :  { %504 = vmatpush.bf16.msra.mxu0 %v1131_v39  ;;  %v1031_v28 = vor.u32 %v1266_v25, %v1028_v27  ;;  %v1284_v31 = vld [vmem:[%s1860_s6 + $0x94] sm:$0xf]  ;;  %v1099_v32 = vor.u32 %v1285_v30, %v1098_v29  ;;  %v1100_v33 = vld [vmem:[%s1860_s6 + $0x98] sm:$0xf0]  ;;  %v1090_v35 = vld [vmem:[%s1860_s6 + $0x80] sm:$0xf] }
  0x23   :  { %491 = vmatpush.bf16.msrb.mxu3 %v1059_v41  ;;  %v1103_v34 = vor.u32 %v1284_v31, %v1100_v33  ;;  %v1283_v36 = vld [vmem:[%s1860_s6 + $0x84] sm:$0xf0]  ;;  %v1092_v39 = vld [vmem:[%s1860_s6 + $0x88] sm:$0xf0]  ;;  %v105_v41 = vld [vmem:[%s1862_s5] sm:$0x3] }
  0x24   :  { %516 = vmatpush.bf16.msrb.mxu1 %v1087_v61  ;;  %v1124_v61 = vld [vmem:[%s1860_s6 + $0xc8] sm:$0xf0] }
  0x25   :  { %530 = vmatpush.bf16.msrb.mxu2 %v1151_v14  ;;  %v1127_v62 = vor.u32 %v1290_v59, %v1124_v61  ;;  %v1035_v14 = vor.u32 %v1269_v12, %v1034_v11 }
  0x26   :  { %505 = vmatpush.bf16.msra.mxu0 %v1123_v60 }
  0x27   :  { %492 = vmatpush.bf16.msrb.mxu3 %v1051_v54 }
  0x28   :  { %517 = vmatpush.bf16.msrb.mxu1 %v1079_v6  ;;  %v1289_v6 = vld [vmem:[%s1860_s6 + $0xb4] sm:$0xf0] }
  0x29   :  { %531 = vmatpush.bf16.msrb.mxu2 %v1143_v26  ;;  %v1115_v8 = vor.u32 %v1289_v6, %v1114_v5 }
  0x2b   :  { %493 = vmatpush.bf16.msrb.mxu3 %v1043_v2  ;;  %506 = vmatpush.bf16.msra.mxu0 %v1115_v8  ;;  %v544_v2 = vld [vmem:[%s1863_s8] sm:$0x3] }
  0x2c   :  { %518 = vmatpush.bf16.msrb.mxu1 %v1071_v23  ;;  %v1026_v23 = vld [vmem:[%s1860_s6] sm:$0xf]  ;;  %v546_v7 = vperm.slane %v544_v2, 0  ;;  %v547_v11 = vperm.slane %v544_v2, 1  ;;  %v1305_v2 = vld [vmem:[%s1864_s9 + $0x10] sm:$0xff] }
  0x2d   :  { %532 = vmatpush.bf16.msrb.mxu2 %v1135_v38  ;;  %v1027_v26 = vor.u32 %v1267_v24, %v1026_v23  ;;  %v1091_v38 = vor.u32 %v1283_v36, %v1090_v35  ;;  %v1349_v35 = vmov 256.0  }
  0x2e   :  { %1337 = vrcp.f32 %v1349_v35 }
  0x2f   :  { %494 = vmatpush.bf16.msrb.mxu3 %v1035_v14  ;;  %507 = vmatpush.bf16.msra.mxu0 %v1107_v20 }
  0x30   :  { %519 = vmatpush.bf16.msrb.mxu1 %v1063_v37  ;;  %v1282_v37 = vld [vmem:[%s1860_s6 + $0x84] sm:$0xf] }
  0x31   :  { %533 = vmatpush.bf16.msrb.mxu2 %v1127_v62 }
  0x33   :  { %495 = vmatpush.bf16.msrb.mxu3 %v1027_v26  ;;  %508 = vmatpush.bf16.msra.mxu0 %v1099_v32 }
  0x34   :  { %520 = vmatpush.bf16.msrb.mxu1 %v1055_v56  ;;  %v1338_v36 = vpop.eup %1337 }
  0x35   :  { %534 = vmatpush.bf16.msrb.mxu2 %v1119_v10  ;;  %vm577_vm12 = vweird.f32 %v1338_v36 }
  0x37   :  { %509 = vmatpush.bf16.msra.mxu0 %v1091_v38 }
  0x38   :  { %521 = vmatpush.bf16.msrb.mxu1 %v1047_v4 }
  0x39   :  { %535 = vmatpush.bf16.msrb.mxu2 %v1111_v22 }
  0x3c   :  { %522 = vmatpush.bf16.msrb.mxu1 %v1039_v16 }
  0x3d   :  { %536 = vmatpush.bf16.msrb.mxu2 %v1103_v34 }
  0x40   :  { %523 = vmatpush.bf16.msrb.mxu1 %v1031_v28 }
  0x82   :  { %v77_v40 = vpop.f32.mrf.mxu0 }
  0x83   :  { %v78_v43 = vadd.f32 %v1334_v42, %v77_v40  ;;  %v1095_v40 = vor.u32 %v1282_v37, %v1092_v39  ;;  %v573_v37 = vmul.f32 256.0, %v1338_v36 }
  0x85   :  { %v84_v45 = vmul.f32 0.01, %v78_v43  ;;  %vm82_vm2 = vcmp.gt.f32.partialorder %v78_v43, 0.0  ;;  %537 = vmatpush.bf16.msrb.mxu2 %v1095_v40  ;;  %v574_v38 = vsub.f32 1.0, %v573_v37 }
  0x87   :  { %v86_v48 = vsel %vm82_vm2, %v78_v43, %v84_v45  ;;  %v107_v43 = vperm.slane %v105_v41, 0  ;;  %v575_v39 = vmul.f32 %v1338_v36, %v574_v38 }
  0x89   :  { %v576_v40 = vadd.f32 %v1338_v36, %v575_v39 }
  0x8a   :  { %v79_v44 = vpop.f32.mrf.mxu0 }
  0x8b   :  { %v80_v46 = vadd.f32 %v1334_v42, %v79_v44 }
  0x8d   :  { %v85_v47 = vmul.f32 0.01, %v80_v46  ;;  %vm83_vm3 = vcmp.gt.f32.partialorder %v80_v46, 0.0 }
  0x8f   :  { %v87_v49 = vsel %vm83_vm3, %v80_v46, %v85_v47  ;;  %v108_v46 = vperm.slane %v105_v41, 1  ;;  %v578_v41 = vsel %vm577_vm12, %v1338_v36, %v576_v40 }
  0x90   :  { %v88_v50 = vpack.c.bf16 %v87_v49, %v86_v48 }
  0x92   :  { %199 = vmatmul.bf16.vlgmr.msra.gmra.mxu1 %v88_v50  ;;  %213 = vmatmul.bf16.vlgmr.msra.gmra.mxu2 %v88_v50 }
  0x96   :  { %v323_v63 = vpop.f32.mrf.mxu0 }
  0x99   :  { %v309_v62 = vpop.f32.mrf.mxu3 }
  0x9e   :  { %v325_v1 = vpop.f32.mrf.mxu0 }
  0xa1   :  { %v311_v0 = vpop.f32.mrf.mxu3 }
 0x10f   :  { %v200_v42 = vpop.f32.mrf.mxu1 }
 0x110   :  { %v201_v44 = vadd.f32 %v200_v42, %v107_v43 }
 0x112   :  { %v223_v48 = vmul.f32 0.01, %v201_v44  ;;  %vm219_vm4 = vcmp.gt.f32.partialorder %v201_v44, 0.0 }
 0x114   :  { %v227_v52 = vsel %vm219_vm4, %v201_v44, %v223_v48 }
 0x115   :  { %v214_v45 = vpop.f32.mrf.mxu2 }
 0x116   :  { %v215_v50 = vadd.f32 %v214_v45, %v108_v46 }
 0x117   :  { %v202_v47 = vpop.f32.mrf.mxu1 }
 0x118   :  { %v203_v49 = vadd.f32 %v202_v47, %v107_v43  ;;  %v224_v56 = vmul.f32 0.01, %v215_v50  ;;  %vm220_vm6 = vcmp.gt.f32.partialorder %v215_v50, 0.0 }
 0x11a   :  { %vm221_vm5 = vcmp.gt.f32.partialorder %v203_v49, 0.0  ;;  %v225_v51 = vmul.f32 0.01, %v203_v49  ;;  %v228_v59 = vsel %vm220_vm6, %v215_v50, %v224_v56  ;;  %v1310_v56 = vld [vmem:[%s1864_s9 + $0x38] sm:$0xff] }
 0x11b   :  { %757 = vmatpush.bf16.msra.mxu3 %v1310_v56 }
 0x11c   :  { %v229_v53 = vsel %vm221_vm5, %v203_v49, %v225_v51 }
 0x11d   :  { %v216_v54 = vpop.f32.mrf.mxu2  ;;  %v231_v55 = vpack.c.bf16 %v229_v53, %v227_v52 }
 0x11e   :  { %v217_v57 = vadd.f32 %v216_v54, %v108_v46 }
 0x11f   :  { %496 = vmatmul.bf16.vlgmr.msrb.gmra.mxu3 %v231_v55  ;;  %524 = vmatmul.bf16.vlgmr.msrb.gmra.mxu1 %v231_v55 }
 0x120   :  { %vm222_vm7 = vcmp.gt.f32.partialorder %v217_v57, 0.0  ;;  %v226_v58 = vmul.f32 0.01, %v217_v57 }
 0x122   :  { %v230_v60 = vsel %vm222_vm7, %v217_v57, %v226_v58  ;;  %v1318_v57 = vld [vmem:[%s1864_s9 + $0x78] sm:$0xff]  ;;  %v1309_v58 = vld [vmem:[%s1864_s9 + $0x30] sm:$0xff] }
 0x123   :  { %v232_v61 = vpack.c.bf16 %v230_v60, %v228_v59  ;;  %771 = vmatpush.bf16.msrb.mxu0 %v1318_v57  ;;  %v1317_v59 = vld [vmem:[%s1864_s9 + $0x70] sm:$0xff]  ;;  %758 = vmatpush.bf16.msra.mxu3 %v1309_v58  ;;  %v1308_v60 = vld [vmem:[%s1864_s9 + $0x28] sm:$0xff] }
 0x125   :  { %510 = vmatmul.bf16.vlgmr.msra.gmra.mxu0 %v232_v61  ;;  %538 = vmatmul.bf16.vlgmr.msrb.gmra.mxu2 %v232_v61  ;;  %v1316_v61 = vld [vmem:[%s1864_s9 + $0x68] sm:$0xff] }
 0x127   :  { %772 = vmatpush.bf16.msrb.mxu0 %v1317_v59  ;;  %759 = vmatpush.bf16.msra.mxu3 %v1308_v60 }
 0x12b   :  { %773 = vmatpush.bf16.msrb.mxu0 %v1316_v61 }
 0x19c   :  { %v525_v3 = vpop.f32.mrf.mxu1 }
 0x19d   :  { %v526_v9 = vadd.f32 %v525_v3, %v323_v63  ;;  %v1315_v63 = vld [vmem:[%s1864_s9 + $0x60] sm:$0xff]  ;;  %v1313_v3 = vld [vmem:[%s1864_s9 + $0x50] sm:$0xff] }
 0x19e   :  { %774 = vmatpush.bf16.msrb.mxu0 %v1315_v63  ;;  %v1325_v63 = vld [vmem:[%s1867_s11 + $0x30] sm:$0xff] }
 0x1a2   :  { %v497_v4 = vpop.f32.mrf.mxu3  ;;  %v511_v5 = vpop.f32.mrf.mxu0 }
 0x1a3   :  { %v498_v6 = vadd.f32 %v497_v4, %v309_v62  ;;  %v1307_v62 = vld [vmem:[%s1864_s9 + $0x20] sm:$0xff]  ;;  %v1304_v4 = vld [vmem:[%s1864_s9 + $0x8] sm:$0xff] }
 0x1a4   :  { %v527_v18 = vpop.f32.mrf.mxu1  ;;  %760 = vmatpush.bf16.msra.mxu3 %v1307_v62  ;;  %v1326_v62 = vld [vmem:[%s1867_s11 + $0x38] sm:$0xff] }
 0x1a5   :  { %v512_v8 = vadd.f32 %v511_v5, %v498_v6  ;;  %v528_v22 = vadd.f32 %v527_v18, %v325_v1  ;;  %v1314_v1 = vld [vmem:[%s1864_s9 + $0x58] sm:$0xff]  ;;  %v1312_v5 = vld [vmem:[%s1864_s9 + $0x48] sm:$0xff]  ;;  %v1303_v6 = vld [vmem:[%s1864_s9] sm:$0xff]  ;;  %907 = vmatpush.bf16.msra.mxu1 %v1326_v62 }
 0x1a6   :  { %775 = vmatpush.bf16.msrb.mxu0 %v1314_v1  ;;  %v1323_v1 = vld [vmem:[%s1867_s11 + $0x20] sm:$0xff] }
 0x1a7   :  { %v550_v10 = vadd.f32 %v546_v7, %v512_v8 }
 0x1a8   :  { %v539_v12 = vpop.f32.mrf.mxu2 }
 0x1a9   :  { %v540_v13 = vadd.f32 %v539_v12, %v526_v9  ;;  %v558_v17 = vmul.f32 0.01, %v550_v10  ;;  %vm554_vm8 = vcmp.gt.f32.partialorder %v550_v10, 0.0  ;;  %908 = vmatpush.bf16.msra.mxu1 %v1325_v63 }
 0x1aa   :  { %v499_v14 = vpop.f32.mrf.mxu3  ;;  %v513_v19 = vpop.f32.mrf.mxu0  ;;  %776 = vmatpush.bf16.msrb.mxu0 %v1313_v3  ;;  %v1321_v3 = vld [vmem:[%s1867_s11 + $0x10] sm:$0xff] }
 0x1ab   :  { %v551_v15 = vadd.f32 %v547_v11, %v540_v13  ;;  %v500_v16 = vadd.f32 %v499_v14, %v311_v0  ;;  %v562_v24 = vsel %vm554_vm8, %v550_v10, %v558_v17  ;;  %v1306_v0 = vld [vmem:[%s1864_s9 + $0x18] sm:$0xff] }
 0x1ac   :  { %761 = vmatpush.bf16.msra.mxu3 %v1306_v0  ;;  %v1324_v0 = vld [vmem:[%s1867_s11 + $0x28] sm:$0xff] }
 0x1ad   :  { %v514_v20 = vadd.f32 %v513_v19, %v500_v16  ;;  %vm555_vm9 = vcmp.gt.f32.partialorder %v551_v15, 0.0  ;;  %v559_v21 = vmul.f32 0.01, %v551_v15  ;;  %909 = vmatpush.bf16.msra.mxu1 %v1324_v0 }
 0x1ae   :  { %777 = vmatpush.bf16.msrb.mxu0 %v1312_v5  ;;  %v1319_v5 = vld [vmem:[%s1867_s11] sm:$0xff] }
 0x1af   :  { %v552_v23 = vadd.f32 %v546_v7, %v514_v20  ;;  %v563_v25 = vsel %vm555_vm9, %v551_v15, %v559_v21  ;;  %v1311_v7 = vld [vmem:[%s1864_s9 + $0x40] sm:$0xff] }
 0x1b0   :  { %v541_v26 = vpop.f32.mrf.mxu2  ;;  %v566_v27 = vadd.f32 %v563_v25, %v562_v24  ;;  %762 = vmatpush.bf16.msra.mxu3 %v1305_v2  ;;  %v1322_v2 = vld [vmem:[%s1867_s11 + $0x18] sm:$0xff] }
 0x1b1   :  { %v542_v28 = vadd.f32 %v541_v26, %v528_v22  ;;  %v560_v30 = vmul.f32 0.01, %v552_v23  ;;  %vm556_vm10 = vcmp.gt.f32.partialorder %v552_v23, 0.0  ;;  %910 = vmatpush.bf16.msra.mxu1 %v1323_v1 }
 0x1b2   :  { %567 = vadd.xlane.f32.xlu0 %v566_v27  ;;  %778 = vmatpush.bf16.msrb.mxu0 %v1311_v7 }
 0x1b3   :  { %v553_v29 = vadd.f32 %v547_v11, %v542_v28  ;;  %v564_v32 = vsel %vm556_vm10, %v552_v23, %v560_v30 }
 0x1b4   :  { %763 = vmatpush.bf16.msra.mxu3 %v1304_v4  ;;  %v1320_v4 = vld [vmem:[%s1867_s11 + $0x8] sm:$0xff] }
 0x1b5   :  { %vm557_vm11 = vcmp.gt.f32.partialorder %v553_v29, 0.0  ;;  %v561_v31 = vmul.f32 0.01, %v553_v29  ;;  %911 = vmatpush.bf16.msra.mxu1 %v1322_v2 }
 0x1b7   :  { %v565_v33 = vsel %vm557_vm11, %v553_v29, %v561_v31 }
 0x1b8   :  { %v569_v34 = vadd.f32 %v565_v33, %v564_v32  ;;  %764 = vmatpush.bf16.msra.mxu3 %v1303_v6 }
 0x1b9   :  { %912 = vmatpush.bf16.msra.mxu1 %v1321_v3 }
 0x1ba   :  { %570 = vadd.xlane.f32.xlu0 %v569_v34  ;;  %v1335_v34 = vld [vmem:[%s1865_s10] ss:$0 sm:$0xff] }
 0x1bd   :  { %913 = vmatpush.bf16.msra.mxu1 %v1320_v4 }
 0x1c1   :  { %914 = vmatpush.bf16.msra.mxu1 %v1319_v5 }
 0x225   :  { %v568_v42 = vpop.xlane.xlu0 %567 }
 0x226   :  { %v579_v43 = vmul.f32 %v578_v41, %v568_v42 }
 0x228   :  { %v1754_v44 = vsub.f32 %v562_v24, %v579_v43  ;;  %v1756_v45 = vsub.f32 %v563_v25, %v579_v43 }
 0x22a   :  { %v585_v46 = vmul.f32 %v1754_v44, %v1754_v44  ;;  %v586_v47 = vmul.f32 %v1756_v45, %v1756_v45 }
 0x22c   :  { %v589_v48 = vadd.f32 %v586_v47, %v585_v46  ;;  %v1350_v47 = vmov 128.0  }
 0x22d   :  { %v571_v49 = vpop.xlane.xlu0 %570 }
 0x22e   :  { %v580_v50 = vmul.f32 %v578_v41, %v571_v49  ;;  %590 = vadd.xlane.f32.xlu1 %v589_v48 }
 0x230   :  { %v1762_v51 = vsub.f32 %v564_v32, %v580_v50  ;;  %v1764_v52 = vsub.f32 %v565_v33, %v580_v50 }
 0x232   :  { %v587_v53 = vmul.f32 %v1762_v51, %v1762_v51  ;;  %v588_v54 = vmul.f32 %v1764_v52, %v1764_v52 }
 0x234   :  { %v592_v55 = vadd.f32 %v588_v54, %v587_v53 }
 0x236   :  { %593 = vadd.xlane.f32.xlu1 %v592_v55 }
 0x2a1   :  { %v591_v8 = vpop.xlane.xlu1 %590 }
 0x2a2   :  { %v595_v9 = vmul.f32 %v591_v8, %v578_v41 }
 0x2a4   :  { %v597_v10 = vadd.f32 1e-05, %v595_v9 }
 0x2a6   :  { %1339 = vrsqrt.f32 %v597_v10  ;;  %vm605_vm14 = vweird.f32 %v597_v10 }
 0x2a9   :  { %v594_v11 = vpop.xlane.xlu1 %593 }
 0x2aa   :  { %v596_v12 = vmul.f32 %v594_v11, %v578_v41 }
 0x2ac   :  { %v1340_v13 = vpop.eup %1339  ;;  %v598_v14 = vadd.f32 1e-05, %v596_v12 }
 0x2ad   :  { %v600_v15 = vmul.f32 %v1340_v13, %v597_v10  ;;  %vm606_vm13 = vweird.f32 %v1340_v13 }
 0x2ae   :  { %1341 = vrsqrt.f32 %v598_v14  ;;  %vm607_vm0 = vmor %vm605_vm14, %vm606_vm13  ;;  %vm615_vm1 = vweird.f32 %v598_v14 }
 0x2af   :  { %v601_v16 = vmul.f32 %v1340_v13, %v600_v15  ;;  %1343 = vrcp.f32 %v1350_v47 }
 0x2b1   :  { %v602_v17 = vmul.f32 0.5, %v601_v16 }
 0x2b3   :  { %v603_v19 = vsub.f32 1.5, %v602_v17 }
 0x2b4   :  { %v1342_v18 = vpop.eup %1341 }
 0x2b5   :  { %v610_v20 = vmul.f32 %v1342_v18, %v598_v14  ;;  %v604_v22 = vmul.f32 %v1340_v13, %v603_v19  ;;  %vm616_vm15 = vweird.f32 %v1342_v18  ;;  %v1344_v48 = vpop.eup %1343 }
 0x2b6   :  { %vm617_vm2 = vmor %vm615_vm1, %vm616_vm15  ;;  %v796_v49 = vmul.f32 128.0, %v1344_v48  ;;  %vm800_vm5 = vweird.f32 %v1344_v48 }
 0x2b7   :  { %v611_v21 = vmul.f32 %v1342_v18, %v610_v20  ;;  %v608_v25 = vsel %vm607_vm0, %v1340_v13, %v604_v22 }
 0x2b8   :  { %v619_v28 = vmul.f32 %v608_v25, %v1754_v44  ;;  %v620_v30 = vmul.f32 %v608_v25, %v1756_v45  ;;  %v797_v50 = vsub.f32 1.0, %v796_v49 }
 0x2b9   :  { %v612_v23 = vmul.f32 0.5, %v611_v21 }
 0x2bb   :  { %v613_v24 = vsub.f32 1.5, %v612_v23 }
 0x2bd   :  { %v614_v26 = vmul.f32 %v1342_v18, %v613_v24 }
 0x2bf   :  { %v618_v27 = vsel %vm617_vm2, %v1342_v18, %v614_v26 }
 0x2c0   :  { %v621_v29 = vmul.f32 %v618_v27, %v1762_v51  ;;  %v622_v31 = vmul.f32 %v618_v27, %v1764_v52  ;;  %v798_v51 = vmul.f32 %v1344_v48, %v797_v50 }
 0x2c2   :  { %v623_v32 = vpack.c.bf16 %v621_v29, %v619_v28  ;;  %v624_v33 = vpack.c.bf16 %v622_v31, %v620_v30  ;;  %v799_v52 = vadd.f32 %v1344_v48, %v798_v51  ;;  %v1336_v30 = vld [vmem:[%s1866_s12] ss:$0 sm:$0xff] }
 0x2c4   :  { %765 = vmatmul.bf16.vlgmr.msra.gmra.mxu3 %v623_v32  ;;  %779 = vmatmul.bf16.vlgmr.msrb.gmra.mxu0 %v624_v33  ;;  %v801_v53 = vsel %vm800_vm5, %v1344_v48, %v799_v52 }
 0x341   :  { %v780_v35 = vpop.f32.mrf.mxu0 }
 0x347   :  { %v766_v36 = vpop.f32.mrf.mxu3 }
 0x348   :  { %v767_v37 = vadd.f32 %v1335_v34, %v766_v36 }
 0x349   :  { %v782_v43 = vpop.f32.mrf.mxu0 }
 0x34a   :  { %v781_v38 = vadd.f32 %v780_v35, %v767_v37 }
 0x34c   :  { %vm785_vm3 = vcmp.gt.f32.partialorder %v781_v38, 0.0  ;;  %v787_v39 = vmul.f32 0.01, %v781_v38 }
 0x34e   :  { %v789_v40 = vsel %vm785_vm3, %v781_v38, %v787_v39 }
 0x34f   :  { %v768_v41 = vpop.f32.mrf.mxu3  ;;  %791 = vadd.xlane.f32.xlu2 %v789_v40 }
 0x350   :  { %v769_v42 = vadd.f32 %v1335_v34, %v768_v41 }
 0x352   :  { %v783_v44 = vadd.f32 %v782_v43, %v769_v42 }
 0x354   :  { %vm786_vm4 = vcmp.gt.f32.partialorder %v783_v44, 0.0  ;;  %v788_v45 = vmul.f32 0.01, %v783_v44 }
 0x356   :  { %v790_v46 = vsel %vm786_vm4, %v783_v44, %v788_v45 }
 0x357   :  { %793 = vadd.xlane.f32.xlu2 %v790_v46 }
 0x3c2   :  { %v792_v54 = vpop.xlane.xlu2 %791 }
 0x3c3   :  { %v802_v55 = vmul.f32 %v801_v53, %v792_v54 }
 0x3c5   :  { %v804_v56 = vsub.f32 %v789_v40, %v802_v55 }
 0x3c7   :  { %v806_v57 = vmul.f32 %v804_v56, %v804_v56 }
 0x3c9   :  { %808 = vadd.xlane.f32.xlu0 %v806_v57 }
 0x3ca   :  { %v794_v58 = vpop.xlane.xlu2 %793 }
 0x3cb   :  { %v803_v59 = vmul.f32 %v801_v53, %v794_v58 }
 0x3cd   :  { %v805_v60 = vsub.f32 %v790_v46, %v803_v59 }
 0x3cf   :  { %v807_v61 = vmul.f32 %v805_v60, %v805_v60 }
 0x3d1   :  { %810 = vadd.xlane.f32.xlu1 %v807_v61 }
 0x43c   :  { %v809_v6 = vpop.xlane.xlu0 %808 }
 0x43d   :  { %v812_v7 = vmul.f32 %v809_v6, %v801_v53 }
 0x43f   :  { %v814_v8 = vadd.f32 1e-05, %v812_v7 }
 0x441   :  { %1345 = vrsqrt.f32 %v814_v8  ;;  %vm822_vm7 = vweird.f32 %v814_v8 }
 0x444   :  { %v811_v9 = vpop.xlane.xlu1 %810 }
 0x445   :  { %v813_v10 = vmul.f32 %v811_v9, %v801_v53 }
 0x447   :  { %v1346_v11 = vpop.eup %1345  ;;  %v815_v12 = vadd.f32 1e-05, %v813_v10 }
 0x448   :  { %v817_v13 = vmul.f32 %v1346_v11, %v814_v8  ;;  %vm823_vm6 = vweird.f32 %v1346_v11 }
 0x449   :  { %1347 = vrsqrt.f32 %v815_v12  ;;  %vm824_vm9 = vmor %vm822_vm7, %vm823_vm6  ;;  %vm832_vm10 = vweird.f32 %v815_v12 }
 0x44a   :  { %v818_v14 = vmul.f32 %v1346_v11, %v817_v13 }
 0x44c   :  { %v819_v15 = vmul.f32 0.5, %v818_v14 }
 0x44e   :  { %v820_v17 = vsub.f32 1.5, %v819_v15 }
 0x44f   :  { %v1348_v16 = vpop.eup %1347 }
 0x450   :  { %v827_v18 = vmul.f32 %v1348_v16, %v815_v12  ;;  %v821_v20 = vmul.f32 %v1346_v11, %v820_v17  ;;  %vm833_vm8 = vweird.f32 %v1348_v16 }
 0x451   :  { %vm834_vm11 = vmor %vm832_vm10, %vm833_vm8 }
 0x452   :  { %v828_v19 = vmul.f32 %v1348_v16, %v827_v18  ;;  %v825_v23 = vsel %vm824_vm9, %v1346_v11, %v821_v20 }
 0x453   :  { %v836_v26 = vmul.f32 %v825_v23, %v804_v56 }
 0x454   :  { %v829_v21 = vmul.f32 0.5, %v828_v19 }
 0x456   :  { %v830_v22 = vsub.f32 1.5, %v829_v21 }
 0x458   :  { %v831_v24 = vmul.f32 %v1348_v16, %v830_v22 }
 0x45a   :  { %v835_v25 = vsel %vm834_vm11, %v1348_v16, %v831_v24 }
 0x45b   :  { %v837_v27 = vmul.f32 %v835_v25, %v805_v60 }
 0x45d   :  { %v838_v28 = vpack.c.bf16 %v837_v27, %v836_v26 }
 0x45f   :  { %915 = vmatmul.bf16.vlgmr.msra.gmra.mxu1 %v838_v28 }
 0x4dc   :  { %v916_v29 = vpop.f32.mrf.mxu1 }
 0x4dd   :  { %v917_v32 = vadd.f32 %v1336_v30, %v916_v29 }
 0x4e4   :  { %v918_v31 = vpop.f32.mrf.mxu1 }
 0x4e5   :  { %v919_v33 = vadd.f32 %v1336_v30, %v918_v31 }
 0x4e7   :  { %v1330_v34 = vpack.c.bf16 %v919_v33, %v917_v32 }
 0x4e9   :  { %1331 = vst [vmem:[%s1868_s13] sm:$0xff] %v1330_v34  }

</bundles_post_ra>
